<compile_context>
chip_gen: v6e
topology: v6e:2x2x1
jax: 0.10.0
libtpu: 0.0.40
codegen_flags: <defaults>
</compile_context>

<pallas_src>
import functools
import math

import jax
import jax.numpy as jnp
from jax.experimental import pallas as pl
from jax.experimental.pallas import tpu as pltpu


def make_quaternion_mul(kernel):
    """JAX port of the torch helper: kernel is [in_features//4, out_features]."""
    dim = kernel.shape[1] // 4
    r, i, j, k = jnp.split(kernel, [dim, 2 * dim, 3 * dim], axis=1)
    r2 = jnp.concatenate([r, -i, -j, -k], axis=0)
    i2 = jnp.concatenate([i, r, -k, j], axis=0)
    j2 = jnp.concatenate([j, k, r, -i], axis=0)
    k2 = jnp.concatenate([k, -j, i, r], axis=0)
    hamilton = jnp.concatenate([r2, i2, j2, k2], axis=1)
    assert kernel.shape[1] == hamilton.shape[1]
    return hamilton


def _round_up(x, m):
    return ((x + m - 1) // m) * m


def _choose_tm(n_pad, vmem_budget_bytes=8 * 1024 * 1024):
    """Largest row tile in {512, 256, 128} that divides n_pad and whose
    double-buffered bf16 adj tile stays well under the v7x 64 MiB VMEM."""
    for tm in (512, 256, 128):
        if n_pad % tm == 0 and 2 * (tm * n_pad * 2) <= vmem_budget_bytes:
            return tm
    return 128


def _prop_kernel(adj_ref, x_ref, out_ref):
    # adj_ref: [tm, N_pad]    bf16 (streamed, double-buffered per row tile)
    # x_ref  : [N_pad, in_pad] bf16 (constant block index -> VMEM resident)
    # out_ref: [tm, in_pad]    bf16 (lane-dense, unmasked stores)
    acc = jnp.dot(adj_ref[...], x_ref[...], preferred_element_type=jnp.float32)
    out_ref[...] = acc.astype(out_ref.dtype)


def _prop_hamilton_kernel(adj_ref, x_ref, ham_ref, out_ref):
    # Last propagation step fused with the quaternion (hamilton) matmul.
    xp = jnp.dot(adj_ref[...], x_ref[...], preferred_element_type=jnp.float32)
    out = jnp.dot(xp, ham_ref[...], preferred_element_type=jnp.float32)
    out_ref[...] = out.astype(out_ref.dtype)


def _compiler_params():
    return pltpu.CompilerParams(
        # Row tiles are independent within a call -> shard across the two
        # TensorCores on v7x; no-op on single-TC v5e/v6e.
        dimension_semantics=("parallel",),
        # Raise the 16/32 MiB scoped default so larger resident blocks fit.
        vmem_limit_bytes=64 * 1024 * 1024,
    )


def sqgnn_layer_forward(inp, adj, weight, *, step_k=1, tm=None):
    """Forward pass of SQGNN_layer.

    inp    : [N, in_features]  float32
    adj    : [N, N]            float32 (dense stand-in for the sparse adj)
    weight : [in_features//4, out_features] float32
    """
    n, in_features = inp.shape
    out_features = weight.shape[1]
    hamilton = make_quaternion_mul(weight).astype(jnp.float32)

    # Lane-dense padding: last dims become multiples of 128.
    n_pad = _round_up(max(n, 128), 128)
    in_pad = _round_up(max(in_features, 128), 128)
    out_pad = _round_up(max(out_features, 128), 128)
    tm = tm if tm is not None else _choose_tm(n_pad)
    n_tiles = n_pad // tm

    # Zero padding preserves semantics: padded adj rows/cols are zero, so the
    # padded node rows stay zero through every propagation step, and padded
    # hamilton rows/cols keep the padded output region at zero.
    adj_p = jnp.zeros((n_pad, n_pad), jnp.bfloat16).at[:n, :n].set(
        adj.astype(jnp.bfloat16))
    x_p = jnp.zeros((n_pad, in_pad), jnp.bfloat16).at[:n, :in_features].set(
        inp.astype(jnp.bfloat16))
    ham_p = jnp.zeros((in_pad, out_pad), jnp.float32).at[
        :in_features, :out_features].set(hamilton)

    adj_bytes = n_pad * n_pad * 2
    x_bytes = n_pad * in_pad * 2
    ham_bytes = in_pad * out_pad * 4
    out_bytes = n_pad * out_pad * 4
    prop_flops = 2 * n_pad * n_pad * in_pad
    ham_flops = 2 * n_pad * in_pad * out_pad

    prop_call = pl.pallas_call(
        _prop_kernel,
        out_shape=jax.ShapeDtypeStruct((n_pad, in_pad), jnp.bfloat16),
        grid=(n_tiles,),
        in_specs=[
            pl.BlockSpec((tm, n_pad), lambda t: (t, 0)),       # adj row tile
            pl.BlockSpec((n_pad, in_pad), lambda t: (0, 0)),   # resident x
        ],
        out_specs=pl.BlockSpec((tm, in_pad), lambda t: (t, 0)),
        compiler_params=_compiler_params(),
        cost_estimate=pl.CostEstimate(
            flops=prop_flops, transcendentals=0,
            bytes_accessed=adj_bytes + 2 * x_bytes),
    )

    fused_call = pl.pallas_call(
        _prop_hamilton_kernel,
        out_shape=jax.ShapeDtypeStruct((n_pad, out_pad), jnp.float32),
        grid=(n_tiles,),
        in_specs=[
            pl.BlockSpec((tm, n_pad), lambda t: (t, 0)),        # adj row tile
            pl.BlockSpec((n_pad, in_pad), lambda t: (0, 0)),    # resident x
            pl.BlockSpec((in_pad, out_pad), lambda t: (0, 0)),  # resident hamilton
        ],
        out_specs=pl.BlockSpec((tm, out_pad), lambda t: (t, 0)),
        compiler_params=_compiler_params(),
        cost_estimate=pl.CostEstimate(
            flops=prop_flops + ham_flops, transcendentals=0,
            bytes_accessed=adj_bytes + x_bytes + ham_bytes + out_bytes),
    )

    # step_k - 1 plain propagation passes, then the last pass fused with the
    # hamilton matmul (step_k == 1 -> single fused call, matching torch).
    x_cur = x_p
    for _ in range(step_k - 1):
        x_cur = prop_call(adj_p, x_cur)
    out_p = fused_call(adj_p, x_cur, ham_p)

    return out_p[:n, :out_features]


def _reference_forward(inp, adj, weight, step_k):
    hamilton = make_quaternion_mul(weight)
    x = inp
    for _ in range(step_k):
        x = adj @ x
    return x @ hamilton


if __name__ == "__main__":
    # Small shapes consistent with the module: N nodes, in/out divisible by 4.
    N = 16
    in_features = 32
    out_features = 32
    step_k = 2

    key = jax.random.PRNGKey(0)
    k_w, k_x, k_a = jax.random.split(key, 3)

    # Deterministic param init mirroring reset_parameters():
    stdv = math.sqrt(6.0 / (in_features // 4 + out_features))
    weight = jax.random.uniform(
        k_w, (in_features // 4, out_features),
        minval=-stdv, maxval=stdv, dtype=jnp.float32)

    x = jax.random.normal(k_x, (N, in_features), dtype=jnp.float32)
    # Row-normalized dense adjacency (stand-in for the sparse matrix).
    adj_raw = jax.random.uniform(k_a, (N, N), dtype=jnp.float32)
    adj = adj_raw / jnp.sum(adj_raw, axis=1, keepdims=True)

    fwd = jax.jit(functools.partial(sqgnn_layer_forward, step_k=step_k))
    out = fwd(x, adj, weight)
    out = jax.block_until_ready(out)

    ref = _reference_forward(x, adj, weight, step_k)
    assert out.shape == (N, out_features)
    # adj/x are streamed in bf16 (f32 accumulation), so tolerances are looser
    # than the pure-f32 reference.
    assert jnp.allclose(out, ref, atol=5e-2, rtol=5e-2), "mismatch vs reference"

    print("KERNEL_OK")
</pallas_src>

<mosaic_0001>
module attributes {stable_mosaic.version = 11 : i64} {
  func.func @_prop_kernel(%arg0: i32, %arg1: memref<128x128xbf16, #tpu.memory_space<vmem>>, %arg2: memref<128x128xbf16, #tpu.memory_space<vmem>>, %arg3: memref<128x128xbf16, #tpu.memory_space<vmem>>) attributes {dimension_semantics = [#tpu.dimension_semantics<parallel>], iteration_bounds = array<i64: 1>, scalar_prefetch = 0 : i64, scratch_operands = 0 : i64, tpu.core_type = #tpu.core_type<tc>, window_params = [{transform_indices = @transform_0, window_bounds = array<i64: 128, 128>}, {pipeline_mode = #tpu.pipeline_mode<synchronous>, transform_indices = @transform_1, window_bounds = array<i64: 128, 128>}, {transform_indices = @transform_2, window_bounds = array<i64: 128, 128>}]} {
    %c0 = arith.constant 0 : index
    %c0_0 = arith.constant 0 : index
    %0 = vector.load %arg1[%c0, %c0_0] : memref<128x128xbf16, #tpu.memory_space<vmem>>, vector<128x128xbf16>
    %c0_1 = arith.constant 0 : index
    %c0_2 = arith.constant 0 : index
    %1 = vector.load %arg2[%c0_1, %c0_2] : memref<128x128xbf16, #tpu.memory_space<vmem>>, vector<128x128xbf16>
    %cst = arith.constant dense<0.000000e+00> : vector<128x128xf32>
    %2 = tpu.matmul %0, %1, %cst {dimension_numbers = #tpu.dot_dimension_numbers<[1], [0], [0], [1], [0, 0, 1, 1], [], []>} : vector<128x128xbf16>, vector<128x128xbf16>, vector<128x128xf32> -> vector<128x128xf32>
    %3 = arith.truncf %2 : vector<128x128xf32> to vector<128x128xbf16>
    %c0_3 = arith.constant 0 : index
    %c0_4 = arith.constant 0 : index
    %4 = vector.load %arg3[%c0_3, %c0_4] : memref<128x128xbf16, #tpu.memory_space<vmem>>, vector<128x128xbf16>
    tpu.vector_store %arg3[%c0_3, %c0_4], %3 {strides = array<i32>} : memref<128x128xbf16, #tpu.memory_space<vmem>>, vector<128x128xbf16>,
    return
  }
  func.func @transform_0(%arg0: i32) -> (i32, i32) {
    %c0_i32 = arith.constant 0 : i32
    %c0_i32_0 = arith.constant 0 : i32
    return %arg0, %c0_i32 : i32, i32
  }
  func.func @transform_1(%arg0: i32) -> (i32, i32) {
    %c0_i32 = arith.constant 0 : i32
    %c0_i32_0 = arith.constant 0 : i32
    %c0_i32_1 = arith.constant 0 : i32
    return %c0_i32, %c0_i32_0 : i32, i32
  }
  func.func @transform_2(%arg0: i32) -> (i32, i32) {
    %c0_i32 = arith.constant 0 : i32
    %c0_i32_0 = arith.constant 0 : i32
    return %arg0, %c0_i32 : i32, i32
  }
}

module attributes {stable_mosaic.version = 11 : i64} {
  func.func @_prop_hamilton_kernel(%arg0: i32, %arg1: memref<128x128xbf16, #tpu.memory_space<vmem>>, %arg2: memref<128x128xbf16, #tpu.memory_space<vmem>>, %arg3: memref<128x128xf32, #tpu.memory_space<vmem>>, %arg4: memref<128x128xf32, #tpu.memory_space<vmem>>) attributes {dimension_semantics = [#tpu.dimension_semantics<parallel>], iteration_bounds = array<i64: 1>, scalar_prefetch = 0 : i64, scratch_operands = 0 : i64, tpu.core_type = #tpu.core_type<tc>, window_params = [{transform_indices = @transform_0, window_bounds = array<i64: 128, 128>}, {pipeline_mode = #tpu.pipeline_mode<synchronous>, transform_indices = @transform_1, window_bounds = array<i64: 128, 128>}, {pipeline_mode = #tpu.pipeline_mode<synchronous>, transform_indices = @transform_2, window_bounds = array<i64: 128, 128>}, {transform_indices = @transform_3, window_bounds = array<i64: 128, 128>}]} {
    %c0 = arith.constant 0 : index
    %c0_0 = arith.constant 0 : index
    %0 = vector.load %arg1[%c0, %c0_0] : memref<128x128xbf16, #tpu.memory_space<vmem>>, vector<128x128xbf16>
    %c0_1 = arith.constant 0 : index
    %c0_2 = arith.constant 0 : index
    %1 = vector.load %arg2[%c0_1, %c0_2] : memref<128x128xbf16, #tpu.memory_space<vmem>>, vector<128x128xbf16>
    %cst = arith.constant dense<0.000000e+00> : vector<128x128xf32>
    %2 = tpu.matmul %0, %1, %cst {dimension_numbers = #tpu.dot_dimension_numbers<[1], [0], [0], [1], [0, 0, 1, 1], [], []>} : vector<128x128xbf16>, vector<128x128xbf16>, vector<128x128xf32> -> vector<128x128xf32>
    %c0_3 = arith.constant 0 : index
    %c0_4 = arith.constant 0 : index
    %3 = vector.load %arg3[%c0_3, %c0_4] : memref<128x128xf32, #tpu.memory_space<vmem>>, vector<128x128xf32>
    %cst_5 = arith.constant dense<0.000000e+00> : vector<128x128xf32>
    %4 = tpu.matmul %2, %3, %cst_5 {dimension_numbers = #tpu.dot_dimension_numbers<[1], [0], [0], [1], [0, 0, 1, 1], [], []>} : vector<128x128xf32>, vector<128x128xf32>, vector<128x128xf32> -> vector<128x128xf32>
    %c0_6 = arith.constant 0 : index
    %c0_7 = arith.constant 0 : index
    %5 = vector.load %arg4[%c0_6, %c0_7] : memref<128x128xf32, #tpu.memory_space<vmem>>, vector<128x128xf32>
    tpu.vector_store %arg4[%c0_6, %c0_7], %4 {strides = array<i32>} : memref<128x128xf32, #tpu.memory_space<vmem>>, vector<128x128xf32>,
    return
  }
  func.func @transform_0(%arg0: i32) -> (i32, i32) {
    %c0_i32 = arith.constant 0 : i32
    %c0_i32_0 = arith.constant 0 : i32
    return %arg0, %c0_i32 : i32, i32
  }
  func.func @transform_1(%arg0: i32) -> (i32, i32) {
    %c0_i32 = arith.constant 0 : i32
    %c0_i32_0 = arith.constant 0 : i32
    %c0_i32_1 = arith.constant 0 : i32
    return %c0_i32, %c0_i32_0 : i32, i32
  }
  func.func @transform_2(%arg0: i32) -> (i32, i32) {
    %c0_i32 = arith.constant 0 : i32
    %c0_i32_0 = arith.constant 0 : i32
    %c0_i32_1 = arith.constant 0 : i32
    return %c0_i32, %c0_i32_0 : i32, i32
  }
  func.func @transform_3(%arg0: i32) -> (i32, i32) {
    %c0_i32 = arith.constant 0 : i32
    %c0_i32_0 = arith.constant 0 : i32
    return %arg0, %c0_i32 : i32, i32
  }
}

</mosaic_0001>

<bundles_post_ra>
// kernel: neg.6
= control target key start
LH: loop header
LB: loop body
LE: loop exit
PB: predicated region body
PF: predicated region fallthrough
CT: control target
= control target key end

     0   :  { %s24_s0 = inlined_call_operand.vmem [shape: f32[8,8], index: 0, kind: input, shape index: {}]   ;;  %s25_s1 = inlined_call_operand.vmem [shape: f32[8,8], index: 1, kind: output, shape index: {}]  }
   0x1   :  { %v2_v0 = vld [vmem:[%s24_s0] sm:$0xff] }
   0x2   :  { %v5_v1 = vxor.u32 2147483648, %v2_v0 }
   0x4   :  { %7 = vst [vmem:[%s25_s1] sm:$0xff] %v5_v1 }

// kernel: sqgnn_layer_forward.2
= control target key start
LH: loop header
LB: loop body
LE: loop exit
PB: predicated region body
PF: predicated region fallthrough
CT: control target
= control target key end

     0   :  { %s583_s1 = inlined_call_operand.vmem [shape: bf16[128,128], index: 1, kind: input, shape index: {}]   ;;  %s584_s0 = inlined_call_operand.vmem [shape: bf16[128,128], index: 0, kind: input, shape index: {}]   ;;  %s585_s2 = inlined_call_operand.vmem [shape: bf16[128,128], index: 2, kind: output, shape index: {}]  }
   0x1   :  { %v480_v0 = vld [vmem:[%s583_s1 + $0x38] sm:$0xff]   ;;  %v481_v1 = vld [vmem:[%s583_s1 + $0x30] sm:$0xff]   ;;  %v482_v2 = vld [vmem:[%s583_s1 + $0x28] sm:$0xff]  }
   0x2   :  { %432 = vmatprep.subr.bf16.mxu0 %v480_v0  ;;  %464 = vmatprep.subr.bf16.mxu1 %v480_v0  ;;  %v483_v3 = vld [vmem:[%s583_s1 + $0x20] sm:$0xff]   ;;  %v484_v6 = vld [vmem:[%s583_s1 + $0x18] sm:$0xff]   ;;  %v485_v7 = vld [vmem:[%s583_s1 + $0x10] sm:$0xff]  }
   0x3   :  { %433 = vmatpush3.bf16.msra.mxu0 %v480_v0  ;;  %472 = vmatpush3.bf16.msra.mxu1 %v480_v0  ;;  %v488_v4 = vld [vmem:[%s584_s0] sm:$0xff]   ;;  %v486_v8 = vld [vmem:[%s583_s1 + $0x8] sm:$0xff]   ;;  %v492_v12 = vld [vmem:[%s584_s0 + $0x10] sm:$0xff]  }
   0x4   :  { %434 = vmatprep.subr.bf16.mxu0 %v481_v1  ;;  %465 = vmatprep.subr.bf16.mxu1 %v481_v1  ;;  %v489_v5 = vld [vmem:[%s584_s0 + $0x20] sm:$0xff]   ;;  %v490_v10 = vld [vmem:[%s584_s0 + $0x8] sm:$0xff]   ;;  %v493_v13 = vld [vmem:[%s584_s0 + $0x30] sm:$0xff]  }
   0x5   :  { %448 = vmatprep.mubr.bf16.mxu0 %v488_v4  ;;  %456 = vmatprep.mubr.bf16.mxu1 %v489_v5  ;;  %v487_v9 = vld [vmem:[%s583_s1] sm:$0xff]   ;;  %v491_v11 = vld [vmem:[%s584_s0 + $0x28] sm:$0xff]   ;;  %v494_v14 = vld [vmem:[%s584_s0 + $0x18] sm:$0xff]  }
   0x6   :  { %v495_v15 = vld [vmem:[%s584_s0 + $0x38] sm:$0xff]  }
   0x7   :  { %435 = vmatpush3.bf16.msra.mxu0 %v481_v1  ;;  %473 = vmatpush3.bf16.msra.mxu1 %v481_v1 }
   0x8   :  { %436 = vmatprep.subr.bf16.mxu0 %v482_v2  ;;  %466 = vmatprep.subr.bf16.mxu1 %v482_v2 }
   0xb   :  { %437 = vmatpush3.bf16.msra.mxu0 %v482_v2  ;;  %474 = vmatpush3.bf16.msra.mxu1 %v482_v2 }
   0xc   :  { %438 = vmatprep.subr.bf16.mxu0 %v483_v3  ;;  %467 = vmatprep.subr.bf16.mxu1 %v483_v3 }
   0xf   :  { %439 = vmatpush3.bf16.msra.mxu0 %v483_v3  ;;  %475 = vmatpush3.bf16.msra.mxu1 %v483_v3 }
  0x10   :  { %440 = vmatprep.subr.bf16.mxu0 %v484_v6  ;;  %468 = vmatprep.subr.bf16.mxu1 %v484_v6 }
  0x13   :  { %441 = vmatpush3.bf16.msra.mxu0 %v484_v6  ;;  %476 = vmatpush3.bf16.msra.mxu1 %v484_v6 }
  0x14   :  { %442 = vmatprep.subr.bf16.mxu0 %v485_v7  ;;  %469 = vmatprep.subr.bf16.mxu1 %v485_v7 }
  0x17   :  { %443 = vmatpush3.bf16.msra.mxu0 %v485_v7  ;;  %477 = vmatpush3.bf16.msra.mxu1 %v485_v7 }
  0x18   :  { %444 = vmatprep.subr.bf16.mxu0 %v486_v8  ;;  %470 = vmatprep.subr.bf16.mxu1 %v486_v8 }
  0x1b   :  { %445 = vmatpush3.bf16.msra.mxu0 %v486_v8  ;;  %478 = vmatpush3.bf16.msra.mxu1 %v486_v8 }
  0x1c   :  { %446 = vmatprep.subr.bf16.mxu0 %v487_v9  ;;  %471 = vmatprep.subr.bf16.mxu1 %v487_v9 }
  0x1f   :  { %447 = vmatpush3.bf16.msra.mxu0 %v487_v9  ;;  %479 = vmatpush3.bf16.msra.mxu1 %v487_v9 }
  0x22   :  { %449 = vmatmul.mubr.bf16.vlgmr.msra.gmra.mxu0 %v490_v10  ;;  %457 = vmatmul.mubr.bf16.vlgmr.msra.gmra.mxu1 %v491_v11 }
  0x23   :  { %452 = vmatprep.mubr.bf16.mxu0 %v492_v12  ;;  %460 = vmatprep.mubr.bf16.mxu1 %v493_v13 }
  0x2a   :  { %453 = vmatmul.mubr.bf16.gmra.mxu0 %v494_v14  ;;  %461 = vmatmul.mubr.bf16.gmra.mxu1 %v495_v15 }
  0xe2   :  { %v450_v16 = vpop.f32.mrf.mxu0  ;;  %v458_v17 = vpop.f32.mrf.mxu1 }
  0xe4   :  { %v174_v18 = vpop.f32.mrf.mxu0  ;;  %v206_v19 = vpop.f32.mrf.mxu1 }
  0xe6   :  { %v451_v20 = vpop.f32.mrf.mxu0  ;;  %v459_v21 = vpop.f32.mrf.mxu1 }
  0xe7   :  { %v377_v22 = vpack.c.bf16 %v451_v20, %v450_v16  ;;  %v397_v23 = vpack.c.bf16 %v459_v21, %v458_v17 }
  0xe8   :  { %v177_v24 = vpop.f32.mrf.mxu0  ;;  %v209_v25 = vpop.f32.mrf.mxu1 }
  0xe9   :  { %409 = vst [vmem:[%s585_s2 + $0x8] sm:$0xff] %v377_v22   ;;  %413 = vst [vmem:[%s585_s2 + $0x28] sm:$0xff] %v397_v23   ;;  %v372_v26 = vpack.c.bf16 %v177_v24, %v174_v18  ;;  %v392_v27 = vpack.c.bf16 %v209_v25, %v206_v19 }
  0xea   :  { %v454_v28 = vpop.f32.mrf.mxu0  ;;  %v462_v29 = vpop.f32.mrf.mxu1 }
  0xeb   :  { %373 = vst [vmem:[%s585_s2] sm:$0xff] %v372_v26   ;;  %412 = vst [vmem:[%s585_s2 + $0x20] sm:$0xff] %v392_v27  }
  0xec   :  { %v190_v30 = vpop.f32.mrf.mxu0  ;;  %v222_v31 = vpop.f32.mrf.mxu1 }
  0xee   :  { %v455_v32 = vpop.f32.mrf.mxu0  ;;  %v463_v33 = vpop.f32.mrf.mxu1 }
  0xef   :  { %v387_v34 = vpack.c.bf16 %v455_v32, %v454_v28  ;;  %v407_v35 = vpack.c.bf16 %v463_v33, %v462_v29 }
  0xf0   :  { %v193_v36 = vpop.f32.mrf.mxu0  ;;  %v225_v37 = vpop.f32.mrf.mxu1 }
  0xf1   :  { %411 = vst [vmem:[%s585_s2 + $0x18] sm:$0xff] %v387_v34   ;;  %415 = vst [vmem:[%s585_s2 + $0x38] sm:$0xff] %v407_v35   ;;  %v382_v38 = vpack.c.bf16 %v193_v36, %v190_v30  ;;  %v402_v39 = vpack.c.bf16 %v225_v37, %v222_v31 }
  0xf3   :  { %410 = vst [vmem:[%s585_s2 + $0x10] sm:$0xff] %v382_v38   ;;  %414 = vst [vmem:[%s585_s2 + $0x30] sm:$0xff] %v402_v39  }

// kernel: sqgnn_layer_forward.3
= control target key start
LH: loop header
LB: loop body
LE: loop exit
PB: predicated region body
PF: predicated region fallthrough
CT: control target
= control target key end

     0   :  { %s753_s1 = inlined_call_operand.vmem [shape: bf16[128,128], index: 1, kind: input, shape index: {}]   ;;  %s754_s0 = inlined_call_operand.vmem [shape: bf16[128,128], index: 0, kind: input, shape index: {}]   ;;  %s755_s2 = inlined_call_operand.vmem [shape: f32[128,128], index: 2, kind: input, shape index: {}]   ;;  %s756_s3 = inlined_call_operand.vmem [shape: f32[128,128], index: 3, kind: output, shape index: {}]  }
   0x1   :  { %v573_v0 = vld [vmem:[%s753_s1 + $0x38] sm:$0xff]   ;;  %v574_v1 = vld [vmem:[%s753_s1 + $0x30] sm:$0xff]   ;;  %v575_v2 = vld [vmem:[%s753_s1 + $0x28] sm:$0xff]  }
   0x2   :  { %485 = vmatprep.subr.bf16.mxu0 %v573_v0  ;;  %v576_v3 = vld [vmem:[%s753_s1 + $0x20] sm:$0xff]   ;;  %v577_v5 = vld [vmem:[%s753_s1 + $0x18] sm:$0xff]   ;;  %v578_v6 = vld [vmem:[%s753_s1 + $0x10] sm:$0xff]  }
   0x3   :  { %486 = vmatpush3.bf16.msra.mxu0 %v573_v0  ;;  %v581_v4 = vld [vmem:[%s754_s0] sm:$0xff]   ;;  %v255_v7 = vld [vmem:[%s755_s2 + $0x78] sm:$0xff]  ;;  %v254_v8 = vld [vmem:[%s755_s2 + $0x70] sm:$0xff] }
   0x4   :  { %487 = vmatprep.subr.bf16.mxu0 %v574_v1  ;;  %501 = vmatprep.mubr.bf16.mxu0 %v581_v4  ;;  %v253_v9 = vld [vmem:[%s755_s2 + $0x68] sm:$0xff]  ;;  %v252_v11 = vld [vmem:[%s755_s2 + $0x60] sm:$0xff]  ;;  %v251_v12 = vld [vmem:[%s755_s2 + $0x58] sm:$0xff] }
   0x5   :  { %517 = vmatprep.subr.mxu1 %v255_v7  ;;  %v579_v10 = vld [vmem:[%s753_s1 + $0x8] sm:$0xff]   ;;  %v580_v13 = vld [vmem:[%s753_s1] sm:$0xff]   ;;  %v250_v14 = vld [vmem:[%s755_s2 + $0x50] sm:$0xff] }
   0x6   :  { %518 = vmatpush3.msra.mxu1 %v255_v7  ;;  %v249_v15 = vld [vmem:[%s755_s2 + $0x48] sm:$0xff]  ;;  %v248_v16 = vld [vmem:[%s755_s2 + $0x40] sm:$0xff]  ;;  %v247_v18 = vld [vmem:[%s755_s2 + $0x38] sm:$0xff] }
   0x7   :  { %488 = vmatpush3.bf16.msra.mxu0 %v574_v1  ;;  %519 = vmatprep.subr.mxu1 %v254_v8  ;;  %v582_v17 = vld [vmem:[%s754_s0 + $0x8] sm:$0xff]   ;;  %v583_v19 = vld [vmem:[%s754_s0 + $0x10] sm:$0xff]   ;;  %v244_v22 = vld [vmem:[%s755_s2 + $0x20] sm:$0xff] }
   0x8   :  { %489 = vmatprep.subr.bf16.mxu0 %v575_v2  ;;  %520 = vmatpush3.msra.mxu1 %v254_v8  ;;  %v246_v20 = vld [vmem:[%s755_s2 + $0x30] sm:$0xff]  ;;  %v245_v21 = vld [vmem:[%s755_s2 + $0x28] sm:$0xff]  ;;  %v584_v23 = vld [vmem:[%s754_s0 + $0x18] sm:$0xff]  }
   0x9   :  { %521 = vmatprep.subr.mxu1 %v253_v9  ;;  %v243_v24 = vld [vmem:[%s755_s2 + $0x18] sm:$0xff]  ;;  %v585_v25 = vld [vmem:[%s754_s0 + $0x20] sm:$0xff]   ;;  %v586_v26 = vld [vmem:[%s754_s0 + $0x28] sm:$0xff]  }
   0xa   :  { %522 = vmatpush3.msra.mxu1 %v253_v9  ;;  %v587_v27 = vld [vmem:[%s754_s0 + $0x30] sm:$0xff]   ;;  %v588_v28 = vld [vmem:[%s754_s0 + $0x38] sm:$0xff]   ;;  %v241_v30 = vld [vmem:[%s755_s2 + $0x8] sm:$0xff] }
   0xb   :  { %490 = vmatpush3.bf16.msra.mxu0 %v575_v2  ;;  %523 = vmatprep.subr.mxu1 %v252_v11  ;;  %v242_v29 = vld [vmem:[%s755_s2 + $0x10] sm:$0xff]  ;;  %v240_v31 = vld [vmem:[%s755_s2] sm:$0xff] }
   0xc   :  { %491 = vmatprep.subr.bf16.mxu0 %v576_v3  ;;  %524 = vmatpush3.msra.mxu1 %v252_v11 }
   0xd   :  { %525 = vmatprep.subr.mxu1 %v251_v12 }
   0xe   :  { %526 = vmatpush3.msra.mxu1 %v251_v12 }
   0xf   :  { %492 = vmatpush3.bf16.msra.mxu0 %v576_v3  ;;  %527 = vmatprep.subr.mxu1 %v250_v14 }
  0x10   :  { %493 = vmatprep.subr.bf16.mxu0 %v577_v5  ;;  %528 = vmatpush3.msra.mxu1 %v250_v14 }
  0x11   :  { %529 = vmatprep.subr.mxu1 %v249_v15 }
  0x12   :  { %530 = vmatpush3.msra.mxu1 %v249_v15 }
  0x13   :  { %494 = vmatpush3.bf16.msra.mxu0 %v577_v5  ;;  %531 = vmatprep.subr.mxu1 %v248_v16 }
  0x14   :  { %495 = vmatprep.subr.bf16.mxu0 %v578_v6  ;;  %532 = vmatpush3.msra.mxu1 %v248_v16 }
  0x15   :  { %533 = vmatprep.subr.mxu1 %v247_v18 }
  0x16   :  { %534 = vmatpush3.msra.mxu1 %v247_v18 }
  0x17   :  { %496 = vmatpush3.bf16.msra.mxu0 %v578_v6  ;;  %535 = vmatprep.subr.mxu1 %v246_v20 }
  0x18   :  { %497 = vmatprep.subr.bf16.mxu0 %v579_v10  ;;  %536 = vmatpush3.msra.mxu1 %v246_v20 }
  0x19   :  { %537 = vmatprep.subr.mxu1 %v245_v21 }
  0x1a   :  { %538 = vmatpush3.msra.mxu1 %v245_v21 }
  0x1b   :  { %498 = vmatpush3.bf16.msra.mxu0 %v579_v10  ;;  %539 = vmatprep.subr.mxu1 %v244_v22 }
  0x1c   :  { %499 = vmatprep.subr.bf16.mxu0 %v580_v13  ;;  %540 = vmatpush3.msra.mxu1 %v244_v22 }
  0x1d   :  { %541 = vmatprep.subr.mxu1 %v243_v24 }
  0x1e   :  { %542 = vmatpush3.msra.mxu1 %v243_v24 }
  0x1f   :  { %500 = vmatpush3.bf16.msra.mxu0 %v580_v13  ;;  %543 = vmatprep.subr.mxu1 %v242_v29 }
  0x20   :  { %544 = vmatpush3.msra.mxu1 %v242_v29 }
  0x21   :  { %545 = vmatprep.subr.mxu1 %v241_v30 }
  0x22   :  { %502 = vmatmul.mubr.bf16.vlgmr.msra.gmra.mxu0 %v582_v17  ;;  %546 = vmatpush3.msra.mxu1 %v241_v30 }
  0x23   :  { %505 = vmatprep.mubr.bf16.mxu0 %v583_v19  ;;  %547 = vmatprep.subr.mxu1 %v240_v31 }
  0x24   :  { %548 = vmatpush3.msra.mxu1 %v240_v31 }
  0x2a   :  { %506 = vmatmul.mubr.bf16.gmra.mxu0 %v584_v23 }
  0x2b   :  { %509 = vmatprep.mubr.bf16.mxu0 %v585_v25 }
  0x32   :  { %510 = vmatmul.mubr.bf16.gmra.mxu0 %v586_v26 }
  0x33   :  { %513 = vmatprep.mubr.bf16.mxu0 %v587_v27 }
  0x3a   :  { %514 = vmatmul.mubr.bf16.gmra.mxu0 %v588_v28 }
  0xe2   :  { %v503_v32 = vpop.f32.mrf.mxu0 }
  0xe4   :  { %v177_v33 = vpop.f32.mrf.mxu0 }
  0xe5   :  { %549 = vmatprep.mubr.f32.mxu1 %v177_v33 }
  0xe6   :  { %v504_v34 = vpop.f32.mrf.mxu0 }
  0xe8   :  { %v180_v35 = vpop.f32.mrf.mxu0 }
  0xe9   :  { %550 = vmatmul.mubr.f32.vlgmr.msra.gmra.mxu1 %v180_v35 }
  0xea   :  { %v507_v36 = vpop.f32.mrf.mxu0  ;;  %552 = vmatprep.mubr.f32.mxu1 %v503_v32 }
  0xec   :  { %v193_v37 = vpop.f32.mrf.mxu0 }
  0xed   :  { %553 = vmatmul.mubr.f32.gmra.mxu1 %v504_v34 }
  0xee   :  { %v508_v38 = vpop.f32.mrf.mxu0  ;;  %555 = vmatprep.mubr.f32.mxu1 %v193_v37 }
  0xf0   :  { %v196_v39 = vpop.f32.mrf.mxu0 }
  0xf1   :  { %556 = vmatmul.mubr.f32.gmra.mxu1 %v196_v39 }
  0xf2   :  { %v511_v40 = vpop.f32.mrf.mxu0  ;;  %558 = vmatprep.mubr.f32.mxu1 %v507_v36 }
  0xf4   :  { %v209_v41 = vpop.f32.mrf.mxu0 }
  0xf5   :  { %559 = vmatmul.mubr.f32.gmra.mxu1 %v508_v38 }
  0xf6   :  { %v512_v42 = vpop.f32.mrf.mxu0  ;;  %561 = vmatprep.mubr.f32.mxu1 %v209_v41 }
  0xf8   :  { %v212_v43 = vpop.f32.mrf.mxu0 }
  0xf9   :  { %562 = vmatmul.mubr.f32.gmra.mxu1 %v212_v43 }
  0xfa   :  { %v515_v44 = vpop.f32.mrf.mxu0  ;;  %564 = vmatprep.mubr.f32.mxu1 %v511_v40 }
  0xfc   :  { %v225_v45 = vpop.f32.mrf.mxu0 }
  0xfd   :  { %565 = vmatmul.mubr.f32.gmra.mxu1 %v512_v42 }
  0xfe   :  { %v516_v46 = vpop.f32.mrf.mxu0  ;;  %567 = vmatprep.mubr.f32.mxu1 %v225_v45 }
 0x100   :  { %v228_v47 = vpop.f32.mrf.mxu0 }
 0x101   :  { %568 = vmatmul.mubr.f32.gmra.mxu1 %v228_v47 }
 0x102   :  { %570 = vmatprep.mubr.f32.mxu1 %v515_v44 }
 0x105   :  { %571 = vmatmul.mubr.f32.gmra.mxu1 %v516_v46 }
 0x1a9   :  { %v551_v48 = vpop.f32.mrf.mxu1 }
 0x1aa   :  { %402 = vst [vmem:[%s756_s3 + $0x8] sm:$0xff] %v551_v48 }
 0x1ab   :  { %v322_v49 = vpop.f32.mrf.mxu1 }
 0x1ac   :  { %401 = vst [vmem:[%s756_s3] sm:$0xff] %v322_v49 }
 0x1ad   :  { %v554_v50 = vpop.f32.mrf.mxu1 }
 0x1ae   :  { %404 = vst [vmem:[%s756_s3 + $0x18] sm:$0xff] %v554_v50 }
 0x1af   :  { %v332_v51 = vpop.f32.mrf.mxu1 }
 0x1b0   :  { %403 = vst [vmem:[%s756_s3 + $0x10] sm:$0xff] %v332_v51 }
 0x1b1   :  { %v557_v52 = vpop.f32.mrf.mxu1 }
 0x1b2   :  { %406 = vst [vmem:[%s756_s3 + $0x28] sm:$0xff] %v557_v52 }
 0x1b3   :  { %v342_v53 = vpop.f32.mrf.mxu1 }
 0x1b4   :  { %405 = vst [vmem:[%s756_s3 + $0x20] sm:$0xff] %v342_v53 }
 0x1b5   :  { %v560_v54 = vpop.f32.mrf.mxu1 }
 0x1b6   :  { %408 = vst [vmem:[%s756_s3 + $0x38] sm:$0xff] %v560_v54 }
 0x1b7   :  { %v352_v55 = vpop.f32.mrf.mxu1 }
 0x1b8   :  { %407 = vst [vmem:[%s756_s3 + $0x30] sm:$0xff] %v352_v55 }
 0x1b9   :  { %v563_v56 = vpop.f32.mrf.mxu1 }
 0x1ba   :  { %410 = vst [vmem:[%s756_s3 + $0x48] sm:$0xff] %v563_v56 }
 0x1bb   :  { %v362_v57 = vpop.f32.mrf.mxu1 }
 0x1bc   :  { %409 = vst [vmem:[%s756_s3 + $0x40] sm:$0xff] %v362_v57 }
 0x1bd   :  { %v566_v58 = vpop.f32.mrf.mxu1 }
 0x1be   :  { %412 = vst [vmem:[%s756_s3 + $0x58] sm:$0xff] %v566_v58 }
 0x1bf   :  { %v372_v59 = vpop.f32.mrf.mxu1 }
 0x1c0   :  { %411 = vst [vmem:[%s756_s3 + $0x50] sm:$0xff] %v372_v59 }
 0x1c1   :  { %v569_v60 = vpop.f32.mrf.mxu1 }
 0x1c2   :  { %414 = vst [vmem:[%s756_s3 + $0x68] sm:$0xff] %v569_v60 }
 0x1c3   :  { %v382_v61 = vpop.f32.mrf.mxu1 }
 0x1c4   :  { %413 = vst [vmem:[%s756_s3 + $0x60] sm:$0xff] %v382_v61 }
 0x1c5   :  { %v572_v62 = vpop.f32.mrf.mxu1 }
 0x1c6   :  { %416 = vst [vmem:[%s756_s3 + $0x78] sm:$0xff] %v572_v62 }
 0x1c7   :  { %v392_v63 = vpop.f32.mrf.mxu1 }
 0x1c8   :  { %415 = vst [vmem:[%s756_s3 + $0x70] sm:$0xff] %v392_v63 }

</bundles_post_ra>
